<compile_context>
chip_gen: v7x
topology: tpu7x:2x2x1
jax: 0.10.0
libtpu: 0.0.40
codegen_flags: <defaults>
</compile_context>

<pallas_src>
import jax
import jax.numpy as jnp
from jax.experimental import pallas as pl
from jax.experimental.pallas import tpu as pltpu


def _round_up(x, m):
    return ((x + m - 1) // m) * m


def image_model_kernel(feat_ref, w_fused_ref, bw_ref, out_ref):
    """Fused (encoder + classifier) forward for one batch tile.

    feat_ref    : (TB, Pd)     bf16  mean-pooled patch pixels (K unpadded)
    w_fused_ref : (Pd, H_pad)  bf16  folded Wp @ Wproj @ W1 (H zero-padded to 128)
    bw_ref      : (8, H_pad)   f32   row 0 = folded bias, rows 1..7 = w2 row
    out_ref     : (8, TB)      f32   lane-dense logits: rows 1..7 = logit (pre-b2),
                                      row 0 = junk (bias row, discarded)
    """
    # Single MXU pass over the folded weights, f32 accumulation.
    h = jnp.dot(feat_ref[...], w_fused_ref[...],
                preferred_element_type=jnp.float32)          # (TB, H_pad) f32
    h = jnp.maximum(h + bw_ref[0:1, :], 0.0)                  # bias + ReLU (f32, VPU)

    # TODO(synk): dropout == identity (inference mode).

    # Final Linear(H, 1) fused with the batch->lane relayout: a tiny second MXU
    # pass (8, H_pad) @ (H_pad, TB) -> (8, TB).  The batch ends up in the lane
    # dimension, so the output block is lane-dense (no (TB, 128) broadcast and
    # no masked narrow stores).  Rows 1..7 all equal the logits; row 0 is junk.
    out_ref[...] = jnp.dot(bw_ref[...], h.T,
                           preferred_element_type=jnp.float32)


def init_params(key, *, channels=3, patch=4, embed_dim=32,
                projection_dim=64, hidden=32):
    """Deterministic synthetic parameters (shapes match the module's __init__)."""
    ks = jax.random.split(key, 8)
    pd = patch * patch * channels
    scale = 0.05
    return {
        'patch': patch,
        'w_patch': scale * jax.random.normal(ks[0], (pd, embed_dim), jnp.float32),
        'b_patch': scale * jax.random.normal(ks[1], (1, embed_dim), jnp.float32),
        'w_proj':  scale * jax.random.normal(ks[2], (embed_dim, projection_dim), jnp.float32),
        'b_proj':  scale * jax.random.normal(ks[3], (1, projection_dim), jnp.float32),
        'w1':      scale * jax.random.normal(ks[4], (projection_dim, hidden), jnp.float32),
        'b1':      scale * jax.random.normal(ks[5], (1, hidden), jnp.float32),
        'w2':      scale * jax.random.normal(ks[6], (hidden, 1), jnp.float32),
        'b2':      scale * jax.random.normal(ks[7], (1, 1), jnp.float32),
    }


def _choose_tile(B, batch_tile):
    """Lane-aligned batch tiles; >= 2 grid steps when the batch allows (so v7x
    can shard across its 2 TensorCores); stays tiny for small B."""
    cap = max(128, _round_up(batch_tile, 128))
    B128 = _round_up(B, 128)
    tb = min(cap, B128)
    if tb == B128 and B128 >= 256:        # would be a single step: split in two
        tb = _round_up(B128 // 2, 128)
    b_pad = _round_up(B, tb)
    return tb, b_pad


def image_model_forward(x_nchw, params, *, batch_tile=2048):
    """x_nchw: (B, C, H, W) float32 image batch (PyTorch layout)."""
    B, C, H, W = x_nchw.shape
    p = params['patch']
    assert H % p == 0 and W % p == 0

    # ---- prologue (XLA): strided average pool over the patch grid ----------
    # mean(patches) computed in one pass, without materializing (B, N, Pd).
    # Feature ordering (py, px, c) matches w_patch's row ordering.
    feat = x_nchw.reshape(B, C, H // p, p, W // p, p).mean(axis=(2, 4))   # (B, C, p, p)
    feat = feat.transpose(0, 2, 3, 1).reshape(B, p * p * C)               # (B, Pd)

    # ---- fold the chained linear layers at trace time ----------------------
    # Linearity: mean-pool commutes with the (linear) patch embed, and
    # patch-embed -> CLIP projection -> classifier L1 fold into one GEMM.
    w_fused = params['w_patch'] @ params['w_proj'] @ params['w1']          # (Pd, Hc)
    b_fused = ((params['b_patch'] @ params['w_proj'] + params['b_proj'])
               @ params['w1'] + params['b1'])                              # (1, Hc)
    w2_row = params['w2'].T                                                # (1, Hc)

    Pd = feat.shape[1]
    Hc = w_fused.shape[1]
    H_pad = _round_up(Hc, 128)      # one lane tile; K (Pd) is NOT padded

    TB, B_pad = _choose_tile(B, batch_tile)

    # bf16 MXU operands (halves the dominant feat DMA); epilogue stays f32.
    feat_p = feat.astype(jnp.bfloat16)
    if B_pad > B:
        feat_p = jnp.pad(feat_p, ((0, B_pad - B), (0, 0)))   # batch remainder only
    w_fused_p = jnp.pad(w_fused, ((0, 0), (0, H_pad - Hc))).astype(jnp.bfloat16)

    # Pack fused bias + classifier-L2 row into one resident (8, H_pad) f32 operand:
    # row 0 = b_fused, rows 1..7 = w2 (so rows 1..7 of the second matmul are logits).
    b_pad_row = jnp.pad(b_fused, ((0, 0), (0, H_pad - Hc)))
    w2_pad_row = jnp.pad(w2_row, ((0, 0), (0, H_pad - Hc)))
    bw = jnp.concatenate(
        [b_pad_row, jnp.broadcast_to(w2_pad_row, (7, H_pad))], axis=0)     # (8, H_pad)

    grid = (B_pad // TB,)
    out = pl.pallas_call(
        image_model_kernel,
        out_shape=jax.ShapeDtypeStruct((8, B_pad), jnp.float32),
        grid_spec=pltpu.PrefetchScalarGridSpec(
            num_scalar_prefetch=0,
            grid=grid,
            in_specs=[
                # batch-tiled activations (lane dim = Pd, unpadded)
                pl.BlockSpec((TB, Pd), lambda b: (b, 0)),
                # weights/bias: index_map ignores b -> fetched once, resident in VMEM.
                # TODO(synk): pipeline_mode=pl.Buffered(1) would halve their VMEM
                # residency; left at the default for compile portability (negligible here).
                pl.BlockSpec((Pd, H_pad), lambda b: (0, 0)),
                pl.BlockSpec((8, H_pad), lambda b: (0, 0)),
            ],
            out_specs=pl.BlockSpec((8, TB), lambda b: (0, b)),
        ),
        compiler_params=pltpu.CompilerParams(
            dimension_semantics=("parallel",)),
    )(feat_p, w_fused_p, bw)

    # logits: row 1 of the lane-dense output, padded batch sliced off; the
    # classifier L2 bias is added here instead of shipping a (1,1) kernel operand.
    return {'logits': out[1, :B] + params['b2'][0, 0]}


if __name__ == "__main__":
    key = jax.random.PRNGKey(0)
    k_param, k_x = jax.random.split(key)

    # Small shapes: batch=2, channels=3, spatial=16, patch=4,
    # embed_dim=32, projection_dim=64, hidden=32.
    params = init_params(k_param, channels=3, patch=4, embed_dim=32,
                         projection_dim=64, hidden=32)
    x = jax.random.normal(k_x, (2, 3, 16, 16), jnp.float32)

    # jit so the avg-pool prologue, weight folding and padding fuse into one
    # XLA program around the pallas_call.
    fwd = jax.jit(lambda xx: image_model_forward(xx, params)['logits'])
    logits = jax.block_until_ready(fwd(x))
    assert logits.shape == (2,), logits.shape
    print("KERNEL_OK")
</pallas_src>

<mosaic_0001>
module attributes {stable_mosaic.version = 11 : i64} {
  func.func @image_model_kernel(%arg0: i32, %arg1: memref<128x48xbf16, #tpu.memory_space<vmem>>, %arg2: memref<48x128xbf16, #tpu.memory_space<vmem>>, %arg3: memref<8x128xf32, #tpu.memory_space<vmem>>, %arg4: memref<8x128xf32, #tpu.memory_space<vmem>>) attributes {dimension_semantics = [#tpu.dimension_semantics<parallel>], iteration_bounds = array<i64: 1>, scalar_prefetch = 0 : i64, scratch_operands = 0 : i64, tpu.core_type = #tpu.core_type<tc>, window_params = [{transform_indices = @transform_0, window_bounds = array<i64: 128, 48>}, {pipeline_mode = #tpu.pipeline_mode<synchronous>, transform_indices = @transform_1, window_bounds = array<i64: 48, 128>}, {pipeline_mode = #tpu.pipeline_mode<synchronous>, transform_indices = @transform_2, window_bounds = array<i64: 8, 128>}, {transform_indices = @transform_3, window_bounds = array<i64: 8, 128>}]} {
    %c0 = arith.constant 0 : index
    %c0_0 = arith.constant 0 : index
    %0 = vector.load %arg1[%c0, %c0_0] : memref<128x48xbf16, #tpu.memory_space<vmem>>, vector<128x48xbf16>
    %c0_1 = arith.constant 0 : index
    %c0_2 = arith.constant 0 : index
    %1 = vector.load %arg2[%c0_1, %c0_2] : memref<48x128xbf16, #tpu.memory_space<vmem>>, vector<48x128xbf16>
    %cst = arith.constant dense<0.000000e+00> : vector<128x128xf32>
    %2 = tpu.matmul %0, %1, %cst {dimension_numbers = #tpu.dot_dimension_numbers<[1], [0], [0], [1], [0, 0, 1, 1], [], []>} : vector<128x48xbf16>, vector<48x128xbf16>, vector<128x128xf32> -> vector<128x128xf32>
    %c0_3 = arith.constant 0 : index
    %c0_4 = arith.constant 0 : index
    %3 = vector.load %arg3[%c0_3, %c0_4] : memref<8x128xf32, #tpu.memory_space<vmem>>, vector<1x128xf32>
    %4 = vector.broadcast %3 : vector<1x128xf32> to vector<128x128xf32>
    %5 = arith.addf %2, %4 : vector<128x128xf32>
    %cst_5 = arith.constant 0.000000e+00 : f32
    %6 = vector.broadcast %cst_5 : f32 to vector<128x128xf32>
    %7 = arith.maximumf %5, %6 : vector<128x128xf32>
    %c0_6 = arith.constant 0 : index
    %c0_7 = arith.constant 0 : index
    %8 = vector.load %arg3[%c0_6, %c0_7] : memref<8x128xf32, #tpu.memory_space<vmem>>, vector<8x128xf32>
    %9 = tpu.transpose %7, [1, 0] : vector<128x128xf32> -> vector<128x128xf32>
    %cst_8 = arith.constant dense<0.000000e+00> : vector<8x128xf32>
    %10 = tpu.matmul %8, %9, %cst_8 {dimension_numbers = #tpu.dot_dimension_numbers<[1], [0], [0], [1], [0, 0, 1, 1], [], []>} : vector<8x128xf32>, vector<128x128xf32>, vector<8x128xf32> -> vector<8x128xf32>
    %c0_9 = arith.constant 0 : index
    %c0_10 = arith.constant 0 : index
    %11 = vector.load %arg4[%c0_9, %c0_10] : memref<8x128xf32, #tpu.memory_space<vmem>>, vector<8x128xf32>
    tpu.vector_store %arg4[%c0_9, %c0_10], %10 {strides = array<i32>} : memref<8x128xf32, #tpu.memory_space<vmem>>, vector<8x128xf32>,
    return
  }
  func.func @transform_0(%arg0: i32) -> (i32, i32) {
    %c0_i32 = arith.constant 0 : i32
    %c0_i32_0 = arith.constant 0 : i32
    return %arg0, %c0_i32 : i32, i32
  }
  func.func @transform_1(%arg0: i32) -> (i32, i32) {
    %c0_i32 = arith.constant 0 : i32
    %c0_i32_0 = arith.constant 0 : i32
    %c0_i32_1 = arith.constant 0 : i32
    return %c0_i32, %c0_i32_0 : i32, i32
  }
  func.func @transform_2(%arg0: i32) -> (i32, i32) {
    %c0_i32 = arith.constant 0 : i32
    %c0_i32_0 = arith.constant 0 : i32
    %c0_i32_1 = arith.constant 0 : i32
    return %c0_i32, %c0_i32_0 : i32, i32
  }
  func.func @transform_3(%arg0: i32) -> (i32, i32) {
    %c0_i32 = arith.constant 0 : i32
    %c0_i32_0 = arith.constant 0 : i32
    return %c0_i32, %arg0 : i32, i32
  }
}

</mosaic_0001>

<bundles_post_ra>
// kernel: _lambda_.1
= control target key start
LH: loop header
LB: loop body
LE: loop exit
PB: predicated region body
PF: predicated region fallthrough
CT: control target
= control target key end

     0   :  { %vm100_vm0 = vcmask 392192   ;;  %v457_v11 = vmov 0.0|0.0   ;;  %vm458_vm1 = vmmov 0   ;;  %v459_v12 = vmov 0.0   ;;  %s538_s1 = inlined_call_operand.vmem [shape: bf16[48,128], index: 1, kind: input, shape index: {}]   ;;  %s539_s0 = inlined_call_operand.vmem [shape: bf16[128,48], index: 0, kind: input, shape index: {}]   ;;  %s540_s2 = inlined_call_operand.vmem [shape: f32[8,128], index: 2, kind: input, shape index: {}]   ;;  %s541_s3 = inlined_call_operand.vmem [shape: f32[8,128], index: 3, kind: output, shape index: {}]  }
   0x1   :  { %v446_v0 = vld [vmem:[%s538_s1] sm:$0xff]   ;;  %v447_v1 = vld [vmem:[%s538_s1 + $0x8] sm:$0xff]   ;;  %v448_v3 = vld [vmem:[%s538_s1 + $0x10] sm:$0xff]   ;;  %419 = vmatprep.subr.bf16.mxu1 %v457_v11  ;;  %416 = vmatprep.mubr.msk.f32.mxu1 %vm458_vm1, %v459_v12 }
   0x2   :  { %362 = vmatprep.subr.bf16.mxu0 %v446_v0  ;;  %v449_v2 = vld [vmem:[%s539_s0] sm:$0xff]   ;;  %v450_v4 = vld [vmem:[%s539_s0 + $0x8] sm:$0xff]   ;;  %v451_v5 = vld [vmem:[%s539_s0 + $0x10] sm:$0xff]  }
   0x3   :  { %363 = vmatpush3.bf16.msra.mxu0 %v446_v0  ;;  %368 = vmatprep.mubr.msk.bf16.mxu0 %vm100_vm0, %v449_v2  ;;  %v452_v6 = vld [vmem:[%s539_s0 + $0x18] sm:$0xff]   ;;  %v453_v7 = vld [vmem:[%s539_s0 + $0x20] sm:$0xff]   ;;  %v454_v8 = vld [vmem:[%s539_s0 + $0x28] sm:$0xff]  }
   0x4   :  { %364 = vmatprep.subr.bf16.mxu0 %v447_v1  ;;  %v455_v9 = vld [vmem:[%s539_s0 + $0x30] sm:$0xff]   ;;  %v456_v10 = vld [vmem:[%s539_s0 + $0x38] sm:$0xff]   ;;  %v314_v13 = vld [vmem:[%s540_s2] ss:$0 sm:$0xff] }
   0x7   :  { %365 = vmatpush3.bf16.msra.mxu0 %v447_v1 }
   0x8   :  { %366 = vmatprep.subr.bf16.mxu0 %v448_v3 }
   0xb   :  { %367 = vmatpush3.bf16.msra.mxu0 %v448_v3 }
   0xe   :  { %369 = vmatmul.mubr.msk.bf16.vlgmr.msra.gmra.mrb[0].mxu0 %vm100_vm0, %v450_v4 }
   0xf   :  { %372 = vmatprep.mubr.msk.bf16.mxu0 %vm100_vm0, %v451_v5 }
  0x16   :  { %373 = vmatmul.mubr.msk.bf16.gmra.mrb[4].mxu0 %vm100_vm0, %v452_v6  ;;  %v238_v6 = vld [vmem:[%s540_s2] sm:$0xff] }
  0x17   :  { %376 = vmatprep.mubr.msk.bf16.mxu0 %vm100_vm0, %v453_v7 }
  0x1e   :  { %377 = vmatmul.mubr.msk.bf16.gmra.mrb[8].mxu0 %vm100_vm0, %v454_v8 }
  0x1f   :  { %380 = vmatprep.mubr.msk.bf16.mxu0 %vm100_vm0, %v455_v9 }
  0x26   :  { %381 = vmatmul.mubr.msk.bf16.gmra.mrb[12].mxu0 %vm100_vm0, %v456_v10 }
  0xe1   :  { %v370_v14 = vpop.f32.mrb[0].mxu0 }
  0xe2   :  { %v168_v15 = vadd.f32 %v370_v14, %v314_v13  ;;  %v159_v16 = vpop.f32.mrb[1].mxu0 }
  0xe3   :  { %v160_v17 = vadd.f32 %v314_v13, %v159_v16  ;;  %v371_v18 = vpop.f32.mrb[2].mxu0 }
  0xe4   :  { %v171_v19 = vadd.f32 %v371_v18, %v314_v13  ;;  %v162_v20 = vpop.f32.mrb[3].mxu0  ;;  %v224_v22 = vmax.f32 %v168_v15, 0.0 }
  0xe5   :  { %v163_v21 = vadd.f32 %v314_v13, %v162_v20  ;;  %v222_v24 = vmax.f32 %v160_v17, 0.0 }
  0xe6   :  { %v225_v23 = vmax.f32 %v171_v19, 0.0 }
  0xe7   :  { %v223_v25 = vmax.f32 %v163_v21, 0.0 }
  0xe8   :  { %v423_v26 = vpack.c.bf16 %v225_v23, %v224_v22 }
  0xe9   :  { %v420_v27 = vpack.c.bf16 %v223_v25, %v222_v24  ;;  %v374_v28 = vpop.f32.mrb[4].mxu0 }
  0xea   :  { %v184_v29 = vadd.f32 %v374_v28, %v314_v13  ;;  %v175_v30 = vpop.f32.mrb[5].mxu0 }
  0xeb   :  { %421 = vmatpush3.bf16.xpose.msra.mxu1 %v420_v27  ;;  %v176_v31 = vadd.f32 %v314_v13, %v175_v30  ;;  %v375_v32 = vpop.f32.mrb[6].mxu0 }
  0xec   :  { %v228_v33 = vmax.f32 %v184_v29, 0.0  ;;  %v187_v34 = vadd.f32 %v375_v32, %v314_v13  ;;  %v178_v35 = vpop.f32.mrb[7].mxu0  ;;  %422 = vmatprep.subr.bf16.mxu1 %v457_v11 }
  0xed   :  { %v226_v36 = vmax.f32 %v176_v31, 0.0  ;;  %v179_v37 = vadd.f32 %v314_v13, %v178_v35 }
  0xee   :  { %v229_v38 = vmax.f32 %v187_v34, 0.0 }
  0xef   :  { %v227_v39 = vmax.f32 %v179_v37, 0.0 }
  0xf0   :  { %v429_v40 = vpack.c.bf16 %v229_v38, %v228_v33 }
  0xf1   :  { %v426_v41 = vpack.c.bf16 %v227_v39, %v226_v36  ;;  %v378_v42 = vpop.f32.mrb[8].mxu0 }
  0xf2   :  { %v200_v43 = vadd.f32 %v378_v42, %v314_v13  ;;  %v191_v44 = vpop.f32.mrb[9].mxu0 }
  0xf3   :  { %424 = vmatpush3.bf16.xpose.msra.mxu1 %v423_v26  ;;  %v192_v45 = vadd.f32 %v314_v13, %v191_v44  ;;  %v379_v46 = vpop.f32.mrb[10].mxu0 }
  0xf4   :  { %425 = vmatprep.subr.bf16.mxu1 %v457_v11  ;;  %v232_v47 = vmax.f32 %v200_v43, 0.0  ;;  %v203_v48 = vadd.f32 %v379_v46, %v314_v13  ;;  %v194_v49 = vpop.f32.mrb[11].mxu0 }
  0xf5   :  { %v230_v50 = vmax.f32 %v192_v45, 0.0  ;;  %v195_v51 = vadd.f32 %v314_v13, %v194_v49 }
  0xf6   :  { %v233_v52 = vmax.f32 %v203_v48, 0.0 }
  0xf7   :  { %v231_v53 = vmax.f32 %v195_v51, 0.0 }
  0xf8   :  { %v435_v54 = vpack.c.bf16 %v233_v52, %v232_v47 }
  0xf9   :  { %v432_v55 = vpack.c.bf16 %v231_v53, %v230_v50  ;;  %v382_v56 = vpop.f32.mrb[12].mxu0 }
  0xfa   :  { %v216_v57 = vadd.f32 %v382_v56, %v314_v13  ;;  %v207_v58 = vpop.f32.mrb[13].mxu0 }
  0xfb   :  { %427 = vmatpush3.bf16.xpose.msra.mxu1 %v426_v41  ;;  %v208_v59 = vadd.f32 %v314_v13, %v207_v58  ;;  %v383_v60 = vpop.f32.mrb[14].mxu0 }
  0xfc   :  { %428 = vmatprep.subr.bf16.mxu1 %v457_v11  ;;  %v236_v61 = vmax.f32 %v216_v57, 0.0  ;;  %v219_v62 = vadd.f32 %v383_v60, %v314_v13  ;;  %v210_v63 = vpop.f32.mrb[15].mxu0 }
  0xfd   :  { %v234_v0 = vmax.f32 %v208_v59, 0.0  ;;  %v211_v1 = vadd.f32 %v314_v13, %v210_v63 }
  0xfe   :  { %v237_v2 = vmax.f32 %v219_v62, 0.0 }
  0xff   :  { %v235_v3 = vmax.f32 %v211_v1, 0.0 }
 0x100   :  { %v441_v4 = vpack.c.bf16 %v237_v2, %v236_v61 }
 0x101   :  { %v438_v5 = vpack.c.bf16 %v235_v3, %v234_v0 }
 0x103   :  { %430 = vmatpush3.bf16.xpose.msra.mxu1 %v429_v40 }
 0x104   :  { %431 = vmatprep.subr.bf16.mxu1 %v457_v11 }
 0x10b   :  { %433 = vmatpush3.bf16.xpose.msra.mxu1 %v432_v55 }
 0x10c   :  { %434 = vmatprep.subr.bf16.mxu1 %v457_v11 }
 0x113   :  { %436 = vmatpush3.bf16.xpose.msra.mxu1 %v435_v54 }
 0x114   :  { %437 = vmatprep.subr.bf16.mxu1 %v457_v11 }
 0x11b   :  { %439 = vmatpush3.bf16.xpose.msra.mxu1 %v438_v5 }
 0x11c   :  { %440 = vmatprep.subr.bf16.mxu1 %v457_v11 }
 0x123   :  { %442 = vmatpush3.bf16.xpose.msra.mxu1 %v441_v4 }
 0x12a   :  { %417 = vmatmul.mubr.f32.vlgmr.msra.gmra.mrb[0].mxu1 %v238_v6 }
 0x1fd   :  { %v305_v7 = vpop.f32.mrb[0].mxu1 }
 0x1fe   :  { %309 = vst [vmem:[%s541_s3] sm:$0xff] %v305_v7  ;;  %v418_v8 = vpop.f32.mrb[1].mxu1 }

</bundles_post_ra>
